<compile_context>
chip_gen: v6e
topology: v6e:2x2x1
jax: 0.10.0
libtpu: 0.0.40
codegen_flags: <defaults>
</compile_context>

<pallas_src>
import functools

import jax
import jax.numpy as jnp
from jax import lax
from jax.experimental import pallas as pl
from jax.experimental.pallas import tpu as pltpu

_LANES = 128
_TARGET_BLOCK_BYTES = 4 << 20     # ~4 MiB per input block
_VMEM_LIMIT_BYTES = 32 << 20      # explicit scoped-VMEM limit (fits all gens)


def _fold_to_lanes(x):
    """(Bt, 128*2^k) -> (Bt, 128) lane-wise partial sums.

    Uses only tile-aligned static slices + VALU adds (the same add tree a full
    cross-lane reduce needs anyway, minus the final XLU step)."""
    while x.shape[1] > _LANES:
        h = x.shape[1] // 2
        x = x[:, :h] + x[:, h:]
    return x


def _dice_kernel(p_ref, t_ref, inter_ref, union_ref, inter_acc, union_acc, *,
                 n_valid, nt, nk, nk_per_part, need_mask, pad_chunks, fold):
    # Grid = (parts, batch_blocks, column_chunks); axis 2 is the reduction.
    part = pl.program_id(0)
    k = pl.program_id(2)
    gk = part * nk_per_part + k            # global column-chunk index

    @pl.when(k == 0)
    def _init():
        inter_acc[...] = jnp.zeros_like(inter_acc)
        union_acc[...] = jnp.zeros_like(union_acc)

    p = p_ref[...].astype(jnp.float32)
    t = t_ref[...].astype(jnp.float32)

    def _accum(pp, tt):
        prod = pp * tt
        tot = pp + tt                      # sum(p) + sum(t) in one pass
        if fold:
            inter_acc[...] += _fold_to_lanes(prod)
            union_acc[...] += _fold_to_lanes(tot)
        else:
            inter_acc[...] += jnp.sum(prod, axis=1, keepdims=True)
            union_acc[...] += jnp.sum(tot, axis=1, keepdims=True)

    if need_mask:
        # Steady-state chunks: no masking work at all.
        @pl.when(gk < nk - 1)
        def _steady():
            _accum(p, t)

        # Only the last (ragged) chunk pays for iota/compare/select.
        @pl.when(gk == nk - 1)
        def _ragged():
            col = gk * nt + lax.broadcasted_iota(jnp.int32, p.shape, 1)
            ok = col < n_valid
            _accum(jnp.where(ok, p, 0.0), jnp.where(ok, t, 0.0))
    elif pad_chunks:
        # Column-split duplicated (clamped) chunks contribute nothing.
        @pl.when(gk < nk)
        def _valid():
            _accum(p, t)
    else:
        _accum(p, t)

    @pl.when(k == nk_per_part - 1)
    def _finalize():
        inter_ref[...] = inter_acc[...].reshape(inter_ref.shape)
        union_ref[...] = union_acc[...].reshape(union_ref.shape)


def dice_loss(predicted, target, ep=1e-8):
    """Batch-averaged dice loss matching DiceLoss.forward semantics."""
    assert predicted.shape == target.shape
    B = predicted.shape[0]
    # Flatten each sample: pure reshape of contiguous NCHW — no pad, no copy.
    p = predicted.reshape(B, -1)
    t = target.reshape(B, -1)
    N = p.shape[1]

    itemsize = jnp.dtype(p.dtype).itemsize
    sub = 16 if itemsize <= 2 else 8       # sublane packing granularity

    # ---- Column tile: power-of-two multiple of 128 lanes (so each chunk can
    # be folded to (Bt, 128) with tile-aligned slices), sized toward the block
    # target assuming the smallest batch tile we might pick.
    if N < _LANES:
        Nt = N
        fold = False
    else:
        col_cap = _TARGET_BLOCK_BYTES // (min(B, sub) * itemsize)
        col_cap = max(_LANES, min(col_cap, N))
        Nt = _LANES << ((col_cap // _LANES).bit_length() - 1)
        fold = True
    nk = pl.cdiv(N, Nt)
    need_mask = (N % Nt) != 0

    # ---- Batch tile: fill the block target; multiple of `sub` unless it
    # spans the whole batch.  Prefer >= 2 batch blocks (v7x: 2 TensorCores)
    # when the batch is large enough to split on sublane-tile boundaries.
    rows_fit = max(1, _TARGET_BLOCK_BYTES // (Nt * itemsize))
    if rows_fit >= B:
        if B >= 2 * sub:
            half = (B + 1) // 2
            Bt = min(B, ((half + sub - 1) // sub) * sub)
        else:
            Bt = B
    elif B <= sub:
        Bt = B
    else:
        Bt = min(B, max(sub, (rows_fit // sub) * sub))
    nb = pl.cdiv(B, Bt)

    # ---- v7x: if the batch axis could not be split, split the column range
    # into two parallel parts; partial sums are combined in the wrapper.
    parts = 2 if (nb == 1 and nk >= 2) else 1
    nk_per_part = pl.cdiv(nk, parts)
    pad_chunks = parts * nk_per_part > nk

    acc_w = _LANES if fold else 1

    def _col_index(part, b, k):
        gk = part * nk_per_part + k
        if pad_chunks:
            gk = jnp.minimum(gk, nk - 1)   # duplicate chunk; kernel skips it
        return gk

    in_spec = pl.BlockSpec((Bt, Nt), lambda part, b, k: (b, _col_index(part, b, k)))
    out_spec = pl.BlockSpec((1, Bt, acc_w), lambda part, b, k: (part, b, 0))

    inter_p, union_p = pl.pallas_call(
        functools.partial(_dice_kernel, n_valid=N, nt=Nt, nk=nk,
                          nk_per_part=nk_per_part, need_mask=need_mask,
                          pad_chunks=pad_chunks, fold=fold),
        out_shape=(jax.ShapeDtypeStruct((parts, B, acc_w), jnp.float32),
                   jax.ShapeDtypeStruct((parts, B, acc_w), jnp.float32)),
        grid_spec=pltpu.PrefetchScalarGridSpec(
            num_scalar_prefetch=0,
            grid=(parts, nb, nk_per_part),
            in_specs=[in_spec, in_spec],
            out_specs=[out_spec, out_spec],
            scratch_shapes=[
                pltpu.VMEM((Bt, acc_w), jnp.float32),   # intersection partials
                pltpu.VMEM((Bt, acc_w), jnp.float32),   # union partials
            ],
        ),
        compiler_params=pltpu.CompilerParams(
            dimension_semantics=("parallel", "parallel", "arbitrary"),
            vmem_limit_bytes=_VMEM_LIMIT_BYTES),
    )(p, t)

    # Tiny (parts, B, acc_w) combine in plain XLA.
    inter = jnp.sum(inter_p, axis=(0, 2))            # (B,)
    union = jnp.sum(union_p, axis=(0, 2))            # (B,)
    loss = 1.0 - (2.0 * inter + ep) / (union + ep)   # per-sample dice loss
    return jnp.sum(loss) / B                         # batch_dice_loss


def _reference(predicted, target, ep=1e-8):
    # Pure-JAX reference mirroring the PyTorch module.
    B = predicted.shape[0]
    total = 0.0
    for i in range(B):
        inter = 2.0 * jnp.sum(predicted[i] * target[i]) + ep
        union = jnp.sum(predicted[i]) + jnp.sum(target[i]) + ep
        total = total + (1.0 - inter / union)
    return total / B


if __name__ == "__main__":
    key = jax.random.PRNGKey(0)
    k1, k2 = jax.random.split(key)
    # NCHW, small shapes: batch=2, channels=4, spatial=16x16
    predicted = jax.nn.sigmoid(
        jax.random.normal(k1, (2, 4, 16, 16), dtype=jnp.float32))
    target = (jax.random.uniform(k2, (2, 4, 16, 16)) > 0.5).astype(jnp.float32)

    loss = jax.block_until_ready(dice_loss(predicted, target))
    ref = jax.block_until_ready(_reference(predicted, target))
    assert jnp.allclose(loss, ref, rtol=1e-5, atol=1e-6), (loss, ref)

    # Functional check of the native-bf16 path (accumulation stays f32
    # in-kernel).  This cast is test-only; callers should pass bf16 only if
    # the producer already emits bf16.
    loss_bf16 = jax.block_until_ready(
        dice_loss(predicted.astype(jnp.bfloat16), target.astype(jnp.bfloat16)))
    assert jnp.allclose(loss_bf16, ref, atol=5e-2), (loss_bf16, ref)

    print("KERNEL_OK")
</pallas_src>

<mosaic_0001>
module attributes {stable_mosaic.version = 11 : i64} {
  func.func @_dice_kernel(%arg0: i32, %arg1: i32, %arg2: i32, %arg3: memref<2x1024xf32, #tpu.memory_space<vmem>>, %arg4: memref<2x1024xf32, #tpu.memory_space<vmem>>, %arg5: memref<1x2x128xf32, #tpu.memory_space<vmem>>, %arg6: memref<1x2x128xf32, #tpu.memory_space<vmem>>, %arg7: memref<2x128xf32, #tpu.memory_space<vmem>>, %arg8: memref<2x128xf32, #tpu.memory_space<vmem>>) attributes {dimension_semantics = [#tpu.dimension_semantics<parallel>, #tpu.dimension_semantics<parallel>, #tpu.dimension_semantics<arbitrary>], iteration_bounds = array<i64: 1, 1, 1>, scalar_prefetch = 0 : i64, scratch_operands = 2 : i64, tpu.core_type = #tpu.core_type<tc>, window_params = [{transform_indices = @transform_0, window_bounds = array<i64: 2, 1024>}, {transform_indices = @transform_1, window_bounds = array<i64: 2, 1024>}, {transform_indices = @transform_2, window_bounds = array<i64: 1, 2, 128>}, {transform_indices = @transform_3, window_bounds = array<i64: 1, 2, 128>}]} {
    %c0_i32 = arith.constant 0 : i32
    %0 = arith.cmpi eq, %arg2, %c0_i32 : i32
    %1 = arith.extui %0 : i1 to i32
    %c0_i32_0 = arith.constant 0 : i32
    %2 = arith.cmpi ne, %1, %c0_i32_0 : i32
    scf.if %2 {
      %cst = arith.constant 0.000000e+00 : f32
      %34 = vector.broadcast %cst : f32 to vector<2x128xf32>
      %c0_14 = arith.constant 0 : index
      %c0_15 = arith.constant 0 : index
      %35 = vector.load %arg7[%c0_14, %c0_15] : memref<2x128xf32, #tpu.memory_space<vmem>>, vector<2x128xf32>
      tpu.vector_store %arg7[%c0_14, %c0_15], %34 {strides = array<i32>} : memref<2x128xf32, #tpu.memory_space<vmem>>, vector<2x128xf32>,
      %cst_16 = arith.constant 0.000000e+00 : f32
      %36 = vector.broadcast %cst_16 : f32 to vector<2x128xf32>
      %c0_17 = arith.constant 0 : index
      %c0_18 = arith.constant 0 : index
      %37 = vector.load %arg8[%c0_17, %c0_18] : memref<2x128xf32, #tpu.memory_space<vmem>>, vector<2x128xf32>
      tpu.vector_store %arg8[%c0_17, %c0_18], %36 {strides = array<i32>} : memref<2x128xf32, #tpu.memory_space<vmem>>, vector<2x128xf32>,
    } else {
    }
    %c0 = arith.constant 0 : index
    %c0_1 = arith.constant 0 : index
    %3 = vector.load %arg3[%c0, %c0_1] : memref<2x1024xf32, #tpu.memory_space<vmem>>, vector<2x1024xf32>
    %c0_2 = arith.constant 0 : index
    %c0_3 = arith.constant 0 : index
    %4 = vector.load %arg4[%c0_2, %c0_3] : memref<2x1024xf32, #tpu.memory_space<vmem>>, vector<2x1024xf32>
    %5 = arith.mulf %3, %4 : vector<2x1024xf32>
    %6 = arith.addf %3, %4 : vector<2x1024xf32>
    %c0_4 = arith.constant 0 : index
    %c0_5 = arith.constant 0 : index
    %7 = vector.load %arg7[%c0_4, %c0_5] : memref<2x128xf32, #tpu.memory_space<vmem>>, vector<2x128xf32>
    %8 = vector.extract_strided_slice %5 {offsets = [0, 0], sizes = [2, 512], strides = [1, 1]} : vector<2x1024xf32> to vector<2x512xf32>
    %9 = vector.extract_strided_slice %5 {offsets = [0, 512], sizes = [2, 512], strides = [1, 1]} : vector<2x1024xf32> to vector<2x512xf32>
    %10 = arith.addf %8, %9 : vector<2x512xf32>
    %11 = vector.extract_strided_slice %10 {offsets = [0, 0], sizes = [2, 256], strides = [1, 1]} : vector<2x512xf32> to vector<2x256xf32>
    %12 = vector.extract_strided_slice %10 {offsets = [0, 256], sizes = [2, 256], strides = [1, 1]} : vector<2x512xf32> to vector<2x256xf32>
    %13 = arith.addf %11, %12 : vector<2x256xf32>
    %14 = vector.extract_strided_slice %13 {offsets = [0, 0], sizes = [2, 128], strides = [1, 1]} : vector<2x256xf32> to vector<2x128xf32>
    %15 = vector.extract_strided_slice %13 {offsets = [0, 128], sizes = [2, 128], strides = [1, 1]} : vector<2x256xf32> to vector<2x128xf32>
    %16 = arith.addf %14, %15 : vector<2x128xf32>
    %17 = arith.addf %7, %16 : vector<2x128xf32>
    %c0_6 = arith.constant 0 : index
    %c0_7 = arith.constant 0 : index
    %18 = vector.load %arg7[%c0_6, %c0_7] : memref<2x128xf32, #tpu.memory_space<vmem>>, vector<2x128xf32>
    tpu.vector_store %arg7[%c0_6, %c0_7], %17 {strides = array<i32>} : memref<2x128xf32, #tpu.memory_space<vmem>>, vector<2x128xf32>,
    %c0_8 = arith.constant 0 : index
    %c0_9 = arith.constant 0 : index
    %19 = vector.load %arg8[%c0_8, %c0_9] : memref<2x128xf32, #tpu.memory_space<vmem>>, vector<2x128xf32>
    %20 = vector.extract_strided_slice %6 {offsets = [0, 0], sizes = [2, 512], strides = [1, 1]} : vector<2x1024xf32> to vector<2x512xf32>
    %21 = vector.extract_strided_slice %6 {offsets = [0, 512], sizes = [2, 512], strides = [1, 1]} : vector<2x1024xf32> to vector<2x512xf32>
    %22 = arith.addf %20, %21 : vector<2x512xf32>
    %23 = vector.extract_strided_slice %22 {offsets = [0, 0], sizes = [2, 256], strides = [1, 1]} : vector<2x512xf32> to vector<2x256xf32>
    %24 = vector.extract_strided_slice %22 {offsets = [0, 256], sizes = [2, 256], strides = [1, 1]} : vector<2x512xf32> to vector<2x256xf32>
    %25 = arith.addf %23, %24 : vector<2x256xf32>
    %26 = vector.extract_strided_slice %25 {offsets = [0, 0], sizes = [2, 128], strides = [1, 1]} : vector<2x256xf32> to vector<2x128xf32>
    %27 = vector.extract_strided_slice %25 {offsets = [0, 128], sizes = [2, 128], strides = [1, 1]} : vector<2x256xf32> to vector<2x128xf32>
    %28 = arith.addf %26, %27 : vector<2x128xf32>
    %29 = arith.addf %19, %28 : vector<2x128xf32>
    %c0_10 = arith.constant 0 : index
    %c0_11 = arith.constant 0 : index
    %30 = vector.load %arg8[%c0_10, %c0_11] : memref<2x128xf32, #tpu.memory_space<vmem>>, vector<2x128xf32>
    tpu.vector_store %arg8[%c0_10, %c0_11], %29 {strides = array<i32>} : memref<2x128xf32, #tpu.memory_space<vmem>>, vector<2x128xf32>,
    %c0_i32_12 = arith.constant 0 : i32
    %31 = arith.cmpi eq, %arg2, %c0_i32_12 : i32
    %32 = arith.extui %31 : i1 to i32
    %c0_i32_13 = arith.constant 0 : i32
    %33 = arith.cmpi ne, %32, %c0_i32_13 : i32
    scf.if %33 {
      %c0_14 = arith.constant 0 : index
      %c0_15 = arith.constant 0 : index
      %34 = vector.load %arg7[%c0_14, %c0_15] : memref<2x128xf32, #tpu.memory_space<vmem>>, vector<2x128xf32>
      %35 = vector.shape_cast %34 : vector<2x128xf32> to vector<1x2x128xf32>
      %c0_16 = arith.constant 0 : index
      %c0_17 = arith.constant 0 : index
      %c0_18 = arith.constant 0 : index
      %36 = vector.load %arg5[%c0_16, %c0_17, %c0_18] : memref<1x2x128xf32, #tpu.memory_space<vmem>>, vector<1x2x128xf32>
      tpu.vector_store %arg5[%c0_16, %c0_17, %c0_18], %35 {strides = array<i32>} : memref<1x2x128xf32, #tpu.memory_space<vmem>>, vector<1x2x128xf32>,
      %c0_19 = arith.constant 0 : index
      %c0_20 = arith.constant 0 : index
      %37 = vector.load %arg8[%c0_19, %c0_20] : memref<2x128xf32, #tpu.memory_space<vmem>>, vector<2x128xf32>
      %38 = vector.shape_cast %37 : vector<2x128xf32> to vector<1x2x128xf32>
      %c0_21 = arith.constant 0 : index
      %c0_22 = arith.constant 0 : index
      %c0_23 = arith.constant 0 : index
      %39 = vector.load %arg6[%c0_21, %c0_22, %c0_23] : memref<1x2x128xf32, #tpu.memory_space<vmem>>, vector<1x2x128xf32>
      tpu.vector_store %arg6[%c0_21, %c0_22, %c0_23], %38 {strides = array<i32>} : memref<1x2x128xf32, #tpu.memory_space<vmem>>, vector<1x2x128xf32>,
    } else {
    }
    return
  }
  func.func @transform_0(%arg0: i32, %arg1: i32, %arg2: i32) -> (i32, i32) {
    %c1_i32 = arith.constant 1 : i32
    %0 = arith.muli %arg0, %c1_i32 : i32
    %1 = arith.addi %0, %arg2 : i32
    %c0_i32 = arith.constant 0 : i32
    return %arg1, %1 : i32, i32
  }
  func.func @transform_1(%arg0: i32, %arg1: i32, %arg2: i32) -> (i32, i32) {
    %c1_i32 = arith.constant 1 : i32
    %0 = arith.muli %arg0, %c1_i32 : i32
    %1 = arith.addi %0, %arg2 : i32
    %c0_i32 = arith.constant 0 : i32
    return %arg1, %1 : i32, i32
  }
  func.func @transform_2(%arg0: i32, %arg1: i32, %arg2: i32) -> (i32, i32, i32) {
    %c0_i32 = arith.constant 0 : i32
    %c0_i32_0 = arith.constant 0 : i32
    return %arg0, %arg1, %c0_i32 : i32, i32, i32
  }
  func.func @transform_3(%arg0: i32, %arg1: i32, %arg2: i32) -> (i32, i32, i32) {
    %c0_i32 = arith.constant 0 : i32
    %c0_i32_0 = arith.constant 0 : i32
    return %arg0, %arg1, %c0_i32 : i32, i32, i32
  }
}

</mosaic_0001>

<bundles_post_ra>
// kernel: tpu_custom_call.1
= control target key start
LH: loop header
LB: loop body
LE: loop exit
PB: predicated region body
PF: predicated region fallthrough
CT: control target
= control target key end

     0   :  { %9 = vsyncpa [#allocation5], 0  ;;  %s256_s0 = inlined_call_operand.hbm [shape: f32[2,1024], index: 0, kind: input, shape index: {}]   ;;  %s257_s1 = inlined_call_operand.hbm [shape: f32[2,1024], index: 1, kind: input, shape index: {}]   ;;  %s258_s2 = inlined_call_operand.hbm [shape: f32[1,2,128], index: 2, kind: output, shape index: {0}]   ;;  %s259_s3 = inlined_call_operand.hbm [shape: f32[1,2,128], index: 3, kind: output, shape index: {1}]  }
   0x1   :  { %10 = vsyncpa [#allocation8], 0 }
   0x2   :  { %11 = vsyncpa [#allocation6], 0 }
   0x3   :  { %12 = vsyncpa [#allocation11], 0  ;;  %s219_s12 = smov [#allocation4]   ;;  %s220_s14 = smov [#allocation7]  }
   0x4   :  { %s23_s13 = sshll.u32 %s219_s12, 4  ;;  %s37_s15 = sshll.u32 %s220_s14, 4  ;;  %s24_s13 = int_to_ptr.vmem [resolvable:$true] %s23_s13  ;;  %s38_s15 = int_to_ptr.vmem [resolvable:$true] %s37_s15 }
   0x5   :  { %s139_s16 = scalar_lea.vmem %s24_s13, 256  ;;  %p144_p1 = scmp.lt.s32.totalorder %s24_s13, %s24_s13 }
   0x6   :  { %p140_p0 = scmp.ne.s32.totalorder %s24_s13, %s139_s16  ;;  %p145_p2 = scmp.lt.s32.totalorder %s139_s16, %s139_s16 }
   0x8   :  { %p146_p3 = por %p145_p2, %p144_p1 }
   0xa   :  { %p147_p4 = pnand %p146_p3, %p140_p0 }
   0xc   :  { %150 = shalt.err (!%p147_p4)
}
   0xd   :  { %26 = dma.hbm_to_vmem [thread:$0]  %s256_s0, 256, %s24_s13, [#allocation5]  }
   0xe   :  { %s159_s19 = scalar_lea.vmem %s38_s15, 256  ;;  %p164_p6 = scmp.lt.s32.totalorder %s38_s15, %s38_s15 }
   0xf   :  { %p160_p5 = scmp.ne.s32.totalorder %s38_s15, %s159_s19  ;;  %p165_p7 = scmp.lt.s32.totalorder %s159_s19, %s159_s19 }
  0x11   :  { %p166_p8 = por %p165_p7, %p164_p6 }
  0x13   :  { %p167_p9 = pnand %p166_p8, %p160_p5 }
  0x15   :  { %170 = shalt.err (!%p167_p9)
}
  0x16   :  { %40 = dma.hbm_to_vmem [thread:$0]  %s257_s1, 256, %s38_s15, [#allocation8]  }
  0x17   :  { %211 = dma.done.wait [#allocation5], 256  }
  0x18   :  { %212 = vsyncadd [#allocation5], 4294967040 }
  0x19   :  { %213 = dma.done.wait [#allocation8], 256  }
  0x1a   :  { %214 = vsyncadd [#allocation8], 4294967040  ;;  %v221_v0 = vmov 0.0   ;;  %v57_v1 = vld [vmem:[#allocation4] sm:$0xff]  ;;  %v58_v2 = vld [vmem:[#allocation4 + $0x8] sm:$0xff]  ;;  %s222_s0 = smov [#allocation9]  }
  0x1b   :  { %55 = vst [vmem:[#allocation2] sm:$0x3] %v221_v0  ;;  %56 = vst [vmem:[#allocation3] sm:$0x3] %v221_v0  ;;  %v59_v3 = vld [vmem:[#allocation7] sm:$0xff]  ;;  %v60_v4 = vld [vmem:[#allocation7 + $0x8] sm:$0xff] }
  0x1c   :  { %v61_v5 = vmul.f32 %v59_v3, %v57_v1  ;;  %v63_v6 = vadd.f32 %v59_v3, %v57_v1  ;;  %v62_v7 = vmul.f32 %v60_v4, %v58_v2  ;;  %v64_v8 = vadd.f32 %v60_v4, %v58_v2  ;;  %s102_s1 = sshll.u32 %s222_s0, 4  ;;  %s223_s22 = smov [#allocation10]   ;;  %s103_s1 = int_to_ptr.vmem [resolvable:$true] %s102_s1 }
  0x1d   :  { %s112_s23 = sshll.u32 %s223_s22, 4  ;;  %s171_s24 = scalar_lea.vmem %s103_s1, 32  ;;  %s113_s23 = int_to_ptr.vmem [resolvable:$true] %s112_s23 }
  0x1e   :  { %v66_v9 = vadd.f32 %v62_v7, %v61_v5  ;;  %v78_v10 = vadd.f32 %v64_v8, %v63_v6  ;;  %p172_p10 = scmp.ne.s32.totalorder %s103_s1, %s171_s24  ;;  %p176_p11 = scmp.lt.s32.totalorder %s103_s1, %s103_s1 }
  0x1f   :  { %p177_p12 = scmp.lt.s32.totalorder %s171_s24, %s171_s24 }
  0x20   :  { %v68_v11 = vrot.slane %v66_v9, 4  ;;  %v80_v12 = vrot.slane %v78_v10, 4 }
  0x21   :  { %p178_p13 = por %p177_p12, %p176_p11 }
  0x22   :  { %v70_v13 = vadd.f32 %v68_v11, %v66_v9  ;;  %v82_v14 = vadd.f32 %v80_v12, %v78_v10  ;;  %v65_v17 = vld [vmem:[#allocation2] sm:$0x3]  ;;  %v77_v18 = vld [vmem:[#allocation3] sm:$0x3] }
  0x23   :  { %p179_p0 = pnand %p178_p13, %p172_p10 }
  0x24   :  { %v72_v15 = vrot.slane %v70_v13, 2  ;;  %v84_v16 = vrot.slane %v82_v14, 2 }
  0x26   :  { %v74_v19 = vadd.f32 %v72_v15, %v70_v13  ;;  %v86_v20 = vadd.f32 %v84_v16, %v82_v14 }
  0x28   :  { %v75_v21 = vadd.f32 %v74_v19, %v65_v17  ;;  %v87_v22 = vadd.f32 %v86_v20, %v77_v18 }
  0x2a   :  { %76 = vst [vmem:[#allocation2] sm:$0x3] %v75_v21  ;;  %88 = vst [vmem:[#allocation3] sm:$0x3] %v87_v22 }
  0x31   :  { %v92_v23 = vld [vmem:[#allocation2] sm:$0x3]  ;;  %v94_v24 = vld [vmem:[#allocation3] sm:$0x3] }
  0x32   :  { %93 = vst [vmem:[#allocation9] sm:$0x3] %v92_v23  ;;  %95 = vst [vmem:[#allocation10] sm:$0x3] %v94_v24 }
  0x33   :  { %182 = shalt.err (!%p179_p0)
}
  0x34   :  { %105 = dma.vmem_to_hbm [thread:$0]  %s103_s1, 32, %s258_s2, [#allocation6]  }
  0x35   :  { %s191_s27 = scalar_lea.vmem %s113_s23, 32  ;;  %p196_p2 = scmp.lt.s32.totalorder %s113_s23, %s113_s23 }
  0x36   :  { %p192_p1 = scmp.ne.s32.totalorder %s113_s23, %s191_s27  ;;  %p197_p3 = scmp.lt.s32.totalorder %s191_s27, %s191_s27 }
  0x38   :  { %p198_p4 = por %p197_p3, %p196_p2 }
  0x3a   :  { %p199_p5 = pnand %p198_p4, %p192_p1 }
  0x3c   :  { %202 = shalt.err (!%p199_p5)
}
  0x3d   :  { %115 = dma.vmem_to_hbm [thread:$0]  %s113_s23, 32, %s259_s3, [#allocation11]  }
  0x3e   :  { %215 = dma.done.wait [#allocation6], 32  }
  0x3f   :  { %216 = vsyncadd [#allocation6], 4294967264 }
  0x40   :  { %217 = dma.done.wait [#allocation11], 32  }
  0x41   :  { %218 = vsyncadd [#allocation11], 4294967264 }
  0x42   :  { %122 = vsyncpa [#allocation5], 1 }
  0x43   :  { %123 = vsyncpa [#allocation8], 1 }
  0x44   :  { %124 = vsyncpa [#allocation6], 1 }
  0x45   :  { %125 = vsyncpa [#allocation11], 1 }

</bundles_post_ra>
